<compile_context>
chip_gen: v7x
topology: tpu7x:2x2x1
jax: 0.10.0
libtpu: 0.0.40
codegen_flags: <defaults>
</compile_context>

<pallas_src>
import jax
import jax.numpy as jnp
from jax.experimental import pallas as pl
from jax.experimental.pallas import tpu as pltpu

_MIB = 1024 * 1024


def _round_up(x: int, m: int) -> int:
    return ((x + m - 1) // m) * m


def _dtype_bytes(dt) -> int:
    return jnp.dtype(dt).itemsize


def _vmem_capacity_bytes() -> int:
    # Per-TensorCore VMEM. Fall back to the most conservative generation (v7x: 64 MiB).
    try:
        return int(pltpu.get_tpu_info().vmem_capacity_bytes)
    except Exception:
        return 64 * _MIB


# ----------------------------------------------------------------------------
# Kernels
# ----------------------------------------------------------------------------
def _ffn_partial(x_ref, w1t_ref, b1_ref, w2t_ref):
    # One d_ff slice: relu(x @ W1t_slice + b1_slice) @ W2t_slice, accumulated in f32.
    h = jnp.dot(x_ref[...], w1t_ref[...], preferred_element_type=jnp.float32)
    h = jnp.maximum(h + b1_ref[...], 0.0)          # b1 is f32; h stays f32
    return jnp.dot(h.astype(w2t_ref.dtype), w2t_ref[...],
                   preferred_element_type=jnp.float32)


def _ffn_kernel_inplace(x_ref, w1t_ref, b1_ref, w2t_ref, b2_ref, o_ref):
    # float32 output: the output block is VMEM-resident across the d_ff axis,
    # so accumulate directly into it (no extra scratch, no final copy/cast).
    f = pl.program_id(1)

    @pl.when(f == 0)
    def _():
        o_ref[...] = jnp.broadcast_to(b2_ref[...], o_ref.shape).astype(o_ref.dtype)

    o_ref[...] += _ffn_partial(x_ref, w1t_ref, b1_ref, w2t_ref)


def _ffn_kernel_acc(x_ref, w1t_ref, b1_ref, w2t_ref, b2_ref, o_ref, acc_ref):
    # Non-f32 output (e.g. bf16): keep a float32 accumulator scratch.
    f = pl.program_id(1)

    @pl.when(f == 0)
    def _():
        acc_ref[...] = jnp.zeros_like(acc_ref)

    acc_ref[...] += _ffn_partial(x_ref, w1t_ref, b1_ref, w2t_ref)

    @pl.when(f == pl.num_programs(1) - 1)
    def _():
        o_ref[...] = (acc_ref[...] + b2_ref[...]).astype(o_ref.dtype)


# ----------------------------------------------------------------------------
# Parameter preparation (hoist transposes/casts out of the forward path)
# ----------------------------------------------------------------------------
def prepare_ffn_params(w1, b1, w2, b2, *, compute_dtype=jnp.bfloat16):
    """Pre-transpose / pre-cast nn.Linear weights ONCE.

    w1: (d_ff, d_model), b1: (d_ff,), w2: (d_model, d_ff), b2: (d_model,)
    Returns (W1.T, b1_row, W2.T, b2_row) with weights in `compute_dtype`
    (default bf16 for native MXU throughput) and biases kept in float32
    (negligible bandwidth, preserves accuracy).
    """
    F, D = w1.shape
    assert w2.shape == (D, F) and b1.shape == (F,) and b2.shape == (D,)
    w1t = jnp.asarray(w1).T.astype(compute_dtype)        # (D, F)
    w2t = jnp.asarray(w2).T.astype(compute_dtype)        # (F, D)
    b1r = jnp.asarray(b1).reshape(1, F).astype(jnp.float32)
    b2r = jnp.asarray(b2).reshape(1, D).astype(jnp.float32)
    return w1t, b1r, w2t, b2r


def _tf_candidates(F, block_ff):
    """d_ff slice sizes: full F (resident weights) or 128-aligned divisors, descending."""
    if block_ff is not None and F % block_ff == 0 and (block_ff % 128 == 0 or block_ff == F):
        return [block_ff]
    cands = [F]
    start = F - (F % 128)
    cands += [d for d in range(start, 0, -128) if d != F and F % d == 0]
    seen, out = set(), []
    for c in cands:
        if c not in seen:
            seen.add(c)
            out.append(c)
    return out


# ----------------------------------------------------------------------------
# Forward pass
# ----------------------------------------------------------------------------
def position_wise_ffn_prepared(x, params, *, block_rows=512, block_ff=None,
                               vmem_fraction=0.70):
    """FFN forward with pre-prepared params (see prepare_ffn_params)."""
    w1t, b1r, w2t, b2r = params
    B, L, D = x.shape
    assert w1t.shape[0] == D
    F = w1t.shape[1]
    assert w2t.shape == (F, D)

    out_dtype = x.dtype
    compute_dtype = w1t.dtype
    rows = B * L
    x2 = x.reshape(rows, D).astype(compute_dtype)

    cbytes = _dtype_bytes(compute_dtype)
    obytes = _dtype_bytes(out_dtype)
    use_scratch_acc = jnp.dtype(out_dtype) != jnp.dtype(jnp.float32)

    vmem_cap = _vmem_capacity_bytes()
    budget = int(vmem_cap * vmem_fraction)

    def vmem_need(tm, tf):
        need = 2 * tm * D * cbytes                 # x row tile (double-buffered)
        need += 2 * (D * tf + tf * D) * cbytes     # W1.T / W2.T slices
        need += 2 * (tf + D) * 4                   # bias rows (f32)
        need += 2 * tm * D * obytes                # output tile
        if use_scratch_acc:
            need += tm * D * 4                     # f32 accumulator scratch
        return need

    tf_cands = _tf_candidates(F, block_ff)
    tf_min = tf_cands[-1]

    # --- Row tile: biggest VMEM-fitting tile. Prefer tiles that divide `rows`
    #     exactly (no pad / slice passes) and MXU-friendly sizes (>=256 where possible).
    cap = max(8, int(block_rows))

    def fits_tm(tm):
        return vmem_need(tm, tf_min) <= budget

    tm = None
    if rows <= cap and fits_tm(rows):
        tm = rows                                   # full extent: no padding needed
    else:
        cands = [t for t in (1024, 768, 512, 384, 256, 128, 64, 32, 16, 8) if t <= cap]
        for t in cands:                             # exact divisors first (no pad)
            if rows % t == 0 and fits_tm(t):
                tm = t
                break
        if tm is None:
            for t in cands:
                if fits_tm(t):
                    tm = t
                    break
        if tm is None:
            tm = 8

    # --- d_ff tile: the largest slice that fits alongside the chosen row tile.
    #     tf == F makes the weight BlockSpec indices constant -> weights DMA'd once.
    tf = None
    for c in tf_cands:
        if vmem_need(tm, c) <= budget:
            tf = c
            break
    if tf is None:
        # TODO(synk): d_ff has no 128-aligned divisor small enough for the VMEM
        # budget; fall back to the smallest legal slice and rely on the raised limit.
        tf = tf_min

    # Dual-TensorCore (v7x): if weights are fully resident, splitting a single
    # row tile in two costs no extra HBM traffic and keeps the second core busy.
    if tf == F and rows % tm == 0 and rows // tm == 1 and rows % 16 == 0:
        tm = rows // 2

    rows_p = _round_up(rows, tm)
    if rows_p != rows:
        x2 = jnp.pad(x2, ((0, rows_p - rows), (0, 0)))

    grid = (rows_p // tm, F // tf)

    in_specs = [
        pl.BlockSpec((tm, D), lambda i, f: (i, 0)),    # x rows (constant across f)
        pl.BlockSpec((D, tf), lambda i, f: (0, f)),    # W1.T slice (constant across i)
        pl.BlockSpec((1, tf), lambda i, f: (0, f)),    # b1 slice
        pl.BlockSpec((tf, D), lambda i, f: (f, 0)),    # W2.T slice
        pl.BlockSpec((1, D), lambda i, f: (0, 0)),     # b2
    ]
    out_spec = pl.BlockSpec((tm, D), lambda i, f: (i, 0))

    if use_scratch_acc:
        kernel = _ffn_kernel_acc
        scratch_shapes = [pltpu.VMEM((tm, D), jnp.float32)]
    else:
        kernel = _ffn_kernel_inplace
        scratch_shapes = []

    need = vmem_need(tm, tf)
    vmem_limit = int(min(vmem_cap, max(need + need // 4 + 2 * _MIB, 32 * _MIB)))

    out = pl.pallas_call(
        kernel,
        out_shape=jax.ShapeDtypeStruct((rows_p, D), out_dtype),
        grid_spec=pltpu.PrefetchScalarGridSpec(
            num_scalar_prefetch=0,
            grid=grid,
            in_specs=in_specs,
            out_specs=out_spec,
            scratch_shapes=scratch_shapes,
        ),
        compiler_params=pltpu.CompilerParams(
            dimension_semantics=("parallel", "arbitrary"),
            vmem_limit_bytes=vmem_limit,
        ),
    )(x2, w1t, b1r, w2t, b2r)

    if rows_p != rows:
        out = out[:rows]
    return out.reshape(B, L, D)


def position_wise_ffn(x, w1, b1, w2, b2, *, compute_dtype=jnp.bfloat16,
                      block_rows=512, block_ff=None):
    """Convenience wrapper. For production, call prepare_ffn_params once and
    reuse position_wise_ffn_prepared so the transpose/cast is not paid per call."""
    params = prepare_ffn_params(w1, b1, w2, b2, compute_dtype=compute_dtype)
    return position_wise_ffn_prepared(x, params, block_rows=block_rows,
                                      block_ff=block_ff)


def position_wise_ffn_ref(x, w1, b1, w2, b2):
    """Pure-JAX reference mirroring the PyTorch module semantics (full precision)."""
    h = jnp.maximum(jnp.dot(x, w1.T, precision="highest") + b1, 0.0)
    return jnp.dot(h, w2.T, precision="highest") + b2


if __name__ == "__main__":
    def _make_inputs(key, B, L, D, F):
        k_x, k_w1, k_b1, k_w2, k_b2 = jax.random.split(key, 5)
        x = jax.random.normal(k_x, (B, L, D), dtype=jnp.float32)
        # nn.Linear default init: U(-1/sqrt(in_features), 1/sqrt(in_features))
        bound1 = 1.0 / float(D) ** 0.5
        w1 = jax.random.uniform(k_w1, (F, D), jnp.float32, -bound1, bound1)
        b1 = jax.random.uniform(k_b1, (F,), jnp.float32, -bound1, bound1)
        bound2 = 1.0 / float(F) ** 0.5
        w2 = jax.random.uniform(k_w2, (D, F), jnp.float32, -bound2, bound2)
        b2 = jax.random.uniform(k_b2, (D,), jnp.float32, -bound2, bound2)
        return x, w1, b1, w2, b2

    # Small shape from the module spec: batch=2, seq=8, d_model=32, d_ff=64.
    x, w1, b1, w2, b2 = _make_inputs(jax.random.PRNGKey(0), 2, 8, 32, 64)
    ref = position_wise_ffn_ref(x, w1, b1, w2, b2)

    # 1) Exact float32 compute path.
    out_f32 = jax.block_until_ready(
        position_wise_ffn(x, w1, b1, w2, b2, compute_dtype=jnp.float32))
    assert out_f32.shape == x.shape and out_f32.dtype == x.dtype
    assert jnp.allclose(out_f32, ref, atol=1e-4, rtol=1e-4), "f32 path mismatch"

    # 2) Default bf16-MXU path (f32 accumulation), using the prepared-params API.
    params = prepare_ffn_params(w1, b1, w2, b2)      # bf16 weights, f32 biases
    out_bf16 = jax.block_until_ready(position_wise_ffn_prepared(x, params))
    assert out_bf16.dtype == x.dtype
    assert jnp.allclose(out_bf16, ref, atol=3e-2, rtol=3e-2), "bf16 path mismatch"

    # 3) bf16 activations in / bf16 out (exercises the scratch-accumulator kernel).
    out_bf16io = jax.block_until_ready(
        position_wise_ffn_prepared(x.astype(jnp.bfloat16), params))
    assert out_bf16io.dtype == jnp.bfloat16
    assert jnp.allclose(out_bf16io.astype(jnp.float32), ref, atol=5e-2, rtol=5e-2), \
        "bf16 in/out path mismatch"

    # 4) Slightly larger shape to exercise multi-tile rows and the d_ff reduction axis.
    x2, w12, b12, w22, b22 = _make_inputs(jax.random.PRNGKey(1), 2, 128, 256, 1024)
    ref2 = position_wise_ffn_ref(x2, w12, b12, w22, b22)
    out2 = jax.block_until_ready(
        position_wise_ffn(x2, w12, b12, w22, b22, compute_dtype=jnp.float32,
                          block_rows=128, block_ff=256))
    assert jnp.allclose(out2, ref2, atol=2e-3, rtol=2e-3), "tiled path mismatch"

    print("KERNEL_OK")
</pallas_src>

<mosaic_0001>
module attributes {stable_mosaic.version = 11 : i64} {
  func.func @_ffn_kernel_inplace(%arg0: i32, %arg1: i32, %arg2: memref<8x32xf32, #tpu.memory_space<vmem>>, %arg3: memref<32x64xf32, #tpu.memory_space<vmem>>, %arg4: memref<1x64xf32, #tpu.memory_space<vmem>>, %arg5: memref<64x32xf32, #tpu.memory_space<vmem>>, %arg6: memref<1x32xf32, #tpu.memory_space<vmem>>, %arg7: memref<8x32xf32, #tpu.memory_space<vmem>>) attributes {dimension_semantics = [#tpu.dimension_semantics<parallel>, #tpu.dimension_semantics<arbitrary>], iteration_bounds = array<i64: 2, 1>, scalar_prefetch = 0 : i64, scratch_operands = 0 : i64, tpu.core_type = #tpu.core_type<tc>, window_params = [{transform_indices = @transform_0, window_bounds = array<i64: 8, 32>}, {transform_indices = @transform_1, window_bounds = array<i64: 32, 64>}, {transform_indices = @transform_2, window_bounds = array<i64: 1, 64>}, {transform_indices = @transform_3, window_bounds = array<i64: 64, 32>}, {pipeline_mode = #tpu.pipeline_mode<synchronous>, transform_indices = @transform_4, window_bounds = array<i64: 1, 32>}, {transform_indices = @transform_5, window_bounds = array<i64: 8, 32>}]} {
    %c0_i32 = arith.constant 0 : i32
    %0 = arith.cmpi eq, %arg1, %c0_i32 : i32
    %1 = arith.extui %0 : i1 to i32
    %c0_i32_0 = arith.constant 0 : i32
    %2 = arith.cmpi ne, %1, %c0_i32_0 : i32
    scf.if %2 {
      %c0_14 = arith.constant 0 : index
      %c0_15 = arith.constant 0 : index
      %16 = vector.load %arg6[%c0_14, %c0_15] : memref<1x32xf32, #tpu.memory_space<vmem>>, vector<1x32xf32>
      %17 = vector.shape_cast %16 : vector<1x32xf32> to vector<1x32xf32>
      %18 = vector.broadcast %17 : vector<1x32xf32> to vector<8x32xf32>
      %c0_16 = arith.constant 0 : index
      %c0_17 = arith.constant 0 : index
      %19 = vector.load %arg7[%c0_16, %c0_17] : memref<8x32xf32, #tpu.memory_space<vmem>>, vector<8x32xf32>
      tpu.vector_store %arg7[%c0_16, %c0_17], %18 {strides = array<i32>} : memref<8x32xf32, #tpu.memory_space<vmem>>, vector<8x32xf32>,
    } else {
    }
    %c0 = arith.constant 0 : index
    %c0_1 = arith.constant 0 : index
    %3 = vector.load %arg7[%c0, %c0_1] : memref<8x32xf32, #tpu.memory_space<vmem>>, vector<8x32xf32>
    %c0_2 = arith.constant 0 : index
    %c0_3 = arith.constant 0 : index
    %4 = vector.load %arg2[%c0_2, %c0_3] : memref<8x32xf32, #tpu.memory_space<vmem>>, vector<8x32xf32>
    %c0_4 = arith.constant 0 : index
    %c0_5 = arith.constant 0 : index
    %5 = vector.load %arg3[%c0_4, %c0_5] : memref<32x64xf32, #tpu.memory_space<vmem>>, vector<32x64xf32>
    %cst = arith.constant dense<0.000000e+00> : vector<8x64xf32>
    %6 = tpu.matmul %4, %5, %cst {dimension_numbers = #tpu.dot_dimension_numbers<[1], [0], [0], [1], [0, 0, 1, 1], [], []>} : vector<8x32xf32>, vector<32x64xf32>, vector<8x64xf32> -> vector<8x64xf32>
    %c0_6 = arith.constant 0 : index
    %c0_7 = arith.constant 0 : index
    %7 = vector.load %arg4[%c0_6, %c0_7] : memref<1x64xf32, #tpu.memory_space<vmem>>, vector<1x64xf32>
    %8 = vector.broadcast %7 : vector<1x64xf32> to vector<8x64xf32>
    %9 = arith.addf %6, %8 : vector<8x64xf32>
    %cst_8 = arith.constant 0.000000e+00 : f32
    %10 = vector.broadcast %cst_8 : f32 to vector<8x64xf32>
    %11 = arith.maximumf %9, %10 : vector<8x64xf32>
    %c0_9 = arith.constant 0 : index
    %c0_10 = arith.constant 0 : index
    %12 = vector.load %arg5[%c0_9, %c0_10] : memref<64x32xf32, #tpu.memory_space<vmem>>, vector<64x32xf32>
    %cst_11 = arith.constant dense<0.000000e+00> : vector<8x32xf32>
    %13 = tpu.matmul %11, %12, %cst_11 {dimension_numbers = #tpu.dot_dimension_numbers<[1], [0], [0], [1], [0, 0, 1, 1], [], []>} : vector<8x64xf32>, vector<64x32xf32>, vector<8x32xf32> -> vector<8x32xf32>
    %14 = arith.addf %3, %13 : vector<8x32xf32>
    %c0_12 = arith.constant 0 : index
    %c0_13 = arith.constant 0 : index
    %15 = vector.load %arg7[%c0_12, %c0_13] : memref<8x32xf32, #tpu.memory_space<vmem>>, vector<8x32xf32>
    tpu.vector_store %arg7[%c0_12, %c0_13], %14 {strides = array<i32>} : memref<8x32xf32, #tpu.memory_space<vmem>>, vector<8x32xf32>,
    return
  }
  func.func @transform_0(%arg0: i32, %arg1: i32) -> (i32, i32) {
    %c0_i32 = arith.constant 0 : i32
    %c0_i32_0 = arith.constant 0 : i32
    return %arg0, %c0_i32 : i32, i32
  }
  func.func @transform_1(%arg0: i32, %arg1: i32) -> (i32, i32) {
    %c0_i32 = arith.constant 0 : i32
    %c0_i32_0 = arith.constant 0 : i32
    return %c0_i32, %arg1 : i32, i32
  }
  func.func @transform_2(%arg0: i32, %arg1: i32) -> (i32, i32) {
    %c0_i32 = arith.constant 0 : i32
    %c0_i32_0 = arith.constant 0 : i32
    return %c0_i32, %arg1 : i32, i32
  }
  func.func @transform_3(%arg0: i32, %arg1: i32) -> (i32, i32) {
    %c0_i32 = arith.constant 0 : i32
    %c0_i32_0 = arith.constant 0 : i32
    return %arg1, %c0_i32 : i32, i32
  }
  func.func @transform_4(%arg0: i32, %arg1: i32) -> (i32, i32) {
    %c0_i32 = arith.constant 0 : i32
    %c0_i32_0 = arith.constant 0 : i32
    %c0_i32_1 = arith.constant 0 : i32
    return %c0_i32, %c0_i32_0 : i32, i32
  }
  func.func @transform_5(%arg0: i32, %arg1: i32) -> (i32, i32) {
    %c0_i32 = arith.constant 0 : i32
    %c0_i32_0 = arith.constant 0 : i32
    return %arg0, %c0_i32 : i32, i32
  }
}

</mosaic_0001>

<bundles_post_ra>
// kernel: tpu_custom_call.1
= control target key start
LH: loop header
LB: loop body
LE: loop exit
PB: predicated region body
PF: predicated region fallthrough
CT: control target
= control target key end

     0   :  { %10 = vsyncpa [#allocation3], 0  ;;  %s1002_s0 = inlined_call_operand.vmem [shape: f32[16,32], index: 0, kind: input, shape index: {}]   ;;  %s1003_s1 = inlined_call_operand.vmem [shape: f32[32,64], index: 1, kind: input, shape index: {}]   ;;  %s1004_s2 = inlined_call_operand.vmem [shape: f32[1,64], index: 2, kind: input, shape index: {}]   ;;  %s1005_s3 = inlined_call_operand.vmem [shape: f32[64,32], index: 3, kind: input, shape index: {}]   ;;  %s1006_s4 = inlined_call_operand.vmem [shape: f32[1,32], index: 4, kind: input, shape index: {}]   ;;  %s1007_s5 = inlined_call_operand.hbm [shape: f32[16,32], index: 5, kind: output, shape index: {}]  }
   0x1   :  { %12 = vsyncpa [#allocation3 + $0x1], 0  ;;  %s845_s18 = smov 0   ;;  %s847_s19 = smov 0  }
   0x2   :  { %s849_s20 = smov 0   ;;  %s851_s21 = smov 0  }
   0x3   :  { %s853_s22 = smov 0   ;;  %s855_s23 = smov 0  }
   0x4 LB: > { %s593_s24 = sadd.s32 4294967295, %s809_s23   ;;  %s594_s25 = sadd.s32 4294967294, %s809_s23   ;;  %s809_s23 = sphi %s855_s23, %s18_s23   ;;  %s805_s22 = sphi %s853_s22, %s1014_s22   ;;  %s801_s21 = sphi %s851_s21, %s1013_s21   ;;  %s797_s20 = sphi %s849_s20, %s1012_s20   ;;  %s793_s19 = sphi %s847_s19, %s1011_s19   ;;  %s789_s18 = sphi %s845_s18, %s1010_s18  }
   0x5   : > { %s30_s26 = sadd.s32 1, %s805_s22  ;;  %s162_s27 = sadd.s32 1, %s797_s20 }
   0x6   : > { %p32_p0 = scmp.ge.s32.totalorder %s30_s26, 2  ;;  %p172_p1 = scmp.ne.s32.totalorder %s797_s20, %s793_s19 }
   0x7   : > { %p173_p2 = scmp.eq.s32.totalorder %s593_s24, 1  ;;  %p178_p3 = scmp.ne.s32.totalorder %s793_s19, %s789_s18 }
   0x8   : > { %s1016_s26 = smov (%p32_p0, %s30_s26), 0  ;;  %p179_p5 = scmp.eq.s32.totalorder %s594_s25, 1 }
   0x9   : > { %p885_p4 = por %p173_p2, %p172_p1  ;;  %s159_s29 = ssub.s32 %s805_s22, %s1016_s26 }
   0xa   : > { %p600_p6 = scmp.ge.s32.totalorder %s809_s23, 1  ;;  %p160_p7 = scmp.eq.s32.totalorder %s159_s29, 0 }
   0xb   : > { %p892_p8 = por %p179_p5, %p178_p3  ;;  %p229_p9 = scmp.lt.s32.totalorder %s809_s23, 3 }
   0xc   : > { %s898_s6 = scalar_select %p160_p7, %s797_s20, %s162_s27  }
   0xd   : > { %p230_p10 = pnand %p600_p6, %p229_p9 }
   0xe   : > { %v300_v0 = vld [vmem:[%s1003_s1] sm:$0xff] (!%p230_p10)  ;;  %v301_v1 = vld [vmem:[%s1003_s1 + $0x8] sm:$0xff] (!%p230_p10)  ;;  %v302_v2 = vld [vmem:[%s1003_s1 + $0x10] sm:$0xff] (!%p230_p10)  ;;  %v811_v3 = vmov (!%p230_p10), 0.0|0.0   ;;  %vm812_vm0 = vmmov (!%p230_p10), 0   ;;  %v813_v6 = vmov (!%p230_p10), 0.0  }
   0xf   : > { %233 = sbr.rel (%p230_p10) target bundleno = 471 (0x1d7), region = 40  ;;  %655 = vmatprep.subr.bf16.mxu0 (!%p230_p10), %v811_v3  ;;  %v656_v4 = vpack.c.bf16 (!%p230_p10), %v301_v1, %v300_v0  ;;  %v303_v5 = vld [vmem:[%s1003_s1 + $0x18] sm:$0xff] (!%p230_p10)  ;;  %633 = vmatprep.mubr.msk.f32.mxu0 (!%p230_p10), %vm812_vm0, %v813_v6  ;;  %p268_p11 = scmp.lt.s32.totalorder (!%p230_p10), %s801_s21, 1  ;;  %v386_v7 = vld [vmem:[%s1005_s3] sm:$0xff] (!%p230_p10)  ;;  %v387_v8 = vld [vmem:[%s1005_s3 + $0x8] sm:$0xff] (!%p230_p10)  ;;  %vm296_vm1 = vcmask (!%p230_p10), 261120  }
  0x10   : > { %661 = vmatprep.subr.bf16.mxu1 (!%p230_p10), %v811_v3  ;;  %v662_v9 = vpack.c.bf16 (!%p230_p10), %v387_v8, %v386_v7  ;;  %v388_v10 = vld [vmem:[%s1005_s3 + $0x10] sm:$0xff] (!%p230_p10)  ;;  %v389_v11 = vld [vmem:[%s1005_s3 + $0x18] sm:$0xff] (!%p230_p10)  ;;  %652 = vmatprep.mubr.msk.f32.mxu1 (!%p230_p10), %vm812_vm0, %v813_v6  ;;  %v659_v12 = vpack.c.bf16 (!%p230_p10), %v303_v5, %v302_v2  ;;  %v390_v14 = vld [vmem:[%s1005_s3 + $0x20] sm:$0xff] (!%p230_p10)  ;;  %s265_s29 = sand.u32 (!%p230_p10), 1, %s793_s19   ;;  %vm394_vm2 = vcmask (!%p230_p10), 523264   ;;  %s608_s13 = sshll.u32 (!%p230_p10), %s801_s21, 7 }
  0x11   : > { %657 = vmatpush3.bf16.msra.mxu0 (!%p230_p10), %v656_v4  ;;  %v665_v13 = vpack.c.bf16 (!%p230_p10), %v389_v11, %v388_v10  ;;  %v391_v15 = vld [vmem:[%s1005_s3 + $0x28] sm:$0xff] (!%p230_p10)  ;;  %v392_v18 = vld [vmem:[%s1005_s3 + $0x30] sm:$0xff] (!%p230_p10)  ;;  %v393_v19 = vld [vmem:[%s1005_s3 + $0x38] sm:$0xff] (!%p230_p10)  ;;  %s954_s17 = scalar_lea.hbm (!%p230_p10), %s1007_s5, %s608_s13  ;;  %s471_s24 = scalar_lea.sflag (!%p230_p10), [#allocation3], %s265_s29 }
  0x12   : > { %658 = vmatprep.subr.bf16.mxu0 (!%p230_p10), %v811_v3  ;;  %663 = vmatpush3.bf16.msra.mxu1 (!%p230_p10), %v662_v9  ;;  %v668_v17 = vpack.c.bf16 (!%p230_p10), %v391_v15, %v390_v14  ;;  %v671_v20 = vpack.c.bf16 (!%p230_p10), %v393_v19, %v392_v18  ;;  %v603_v21 = vld [vmem:[%s1006_s4] ss:$0 sm:$0xff] (!%p230_p10) }
  0x13   : > { %664 = vmatprep.subr.bf16.mxu1 (!%p230_p10), %v811_v3  ;;  %v604_v22 = vld [vmem:[%s1004_s2] ss:$0 sm:$0xff] (!%p230_p10) }
  0x15   : > { %660 = vmatpush3.bf16.msra.mxu0 (!%p230_p10), %v659_v12 }
  0x16   : > { %s269_s8 = scalar_select %p268_p11, %s801_s21, 1  ;;  %666 = vmatpush3.bf16.msra.mxu1 %v665_v13 }
  0x17   : > { %667 = vmatprep.subr.bf16.mxu1 %v811_v3  ;;  %s814_s21 = smov [#allocation2]  }
  0x18   : > { %s602_s9 = sshll.u32 %s269_s8, 3  ;;  %s735_s27 = sshll.u32 %s814_s21, 4  ;;  %s736_s27 = int_to_ptr.vmem [resolvable:$false] %s735_s27 }
  0x19   : > { %s271_s16 = scalar_lea.vmem %s1002_s0, %s602_s9  ;;  %s601_s9 = sshll.u32 %s265_s29, 3 }
  0x1a   : > { %v299_v16 = vld [vmem:[%s271_s16] sm:$0xff]  ;;  %669 = vmatpush3.bf16.msra.mxu1 %v668_v17  ;;  %s267_s10 = scalar_lea.vmem [#allocation2], %s601_s9  ;;  %s737_s7 = scalar_lea.vmem %s736_s27, 256 }
  0x1b   : > { %634 = vmatmul.mubr.msk.f32.vlgmr.msra.gmra.mrb[0].mxu0 %vm296_vm1, %v299_v16  ;;  %670 = vmatprep.subr.bf16.mxu1 %v811_v3  ;;  %297 = vst.msk [vmem:[%s267_s10] sm:$0xff] %vm296_vm1, %v603_v21  ;;  %s484_s14 = sshll.u32 %s267_s10, 4  ;;  %s956_s14 = int_to_ptr.vmem [resolvable:$true] %s484_s14 }
  0x1c   : > { %s731_s25 = scalar_lea.vmem %s956_s14, 128  ;;  %p738_p1 = scmp.lt.s32.totalorder %s956_s14, %s736_s27 }
  0x1d   : > { %p732_p12 = scmp.ne.s32.totalorder %s956_s14, %s731_s25  ;;  %p739_p2 = scmp.lt.s32.totalorder %s737_s7, %s731_s25 }
  0x1e   : > { %672 = vmatpush3.bf16.msra.mxu1 %v671_v20 }
  0x1f   : > { %p733_p13 = pnand %p732_p12, %p885_p4  ;;  %p740_p3 = por %p739_p2, %p738_p1 }
  0x21   : > { %p734_p0 = pneg %p733_p13 }
  0x22   : > { %v298_v27 = vld [vmem:[%s267_s10] sm:$0xff] }
  0x23   : > { %p741_p5 = pnand %p740_p3, %p734_p0 }
  0xee   : > { %v381_v23 = vpop.f32.mrb[0].mxu0 }
  0xef   : > { %v382_v24 = vadd.f32 %v604_v22, %v381_v23  ;;  %v635_v25 = vpop.f32.mrb[1].mxu0 }
  0xf1   : > { %v385_v26 = vmax.f32 %v382_v24, 0.0 }
  0xf3   : > { %653 = vmatmul.mubr.msk.f32.vlgmr.msra.gmra.mrb[0].mxu1 %vm394_vm2, %v385_v26 }
 0x1c6   : > { %v464_v28 = vpop.f32.mrb[0].mxu1 }
 0x1c7   : > { %v468_v29 = vadd.f32 %v464_v28, %v298_v27  ;;  %v654_v30 = vpop.f32.mrb[1].mxu1 }
 0x1c9   : > { %469 = vst.msk [vmem:[%s267_s10] sm:$0xff] %vm296_vm1, %v468_v29 }
 0x1ca   : > { %744 = shalt.err (!%p741_p5)
}
 0x1cb   : > { %s745_s29 = scalar_lea.hbm %s954_s17, 128  ;;  %s749_s10 = scalar_lea.hbm %s1007_s5, 256 }
 0x1cc   : > { %p746_p6 = scmp.ne.s32.totalorder %s954_s17, %s745_s29  ;;  %p750_p10 = scmp.lt.u32.totalorder %s954_s17, %s1007_s5 }
 0x1cd   : > { %p751_p11 = scmp.lt.u32.totalorder %s749_s10, %s745_s29  ;;  %p753_p13 = scmp.lt.u32.totalorder %s745_s29, %s954_s17 }
 0x1ce   : > { %p747_p7 = pnand %p746_p6, %p885_p4 }
 0x1cf   : > { %p752_p12 = por %p751_p11, %p750_p10 }
 0x1d0   : > { %p748_p9 = pneg %p747_p7 }
 0x1d1   : > { %p754_p0 = por %p753_p13, %p752_p12 }
 0x1d3   : > { %p755_p1 = pnand %p754_p0, %p748_p9 }
 0x1d5   : > { %758 = shalt.err (!%p755_p1)
}
 0x1d6   : > { %673 = dma.vmem_to_hbm [thread:$0]  (%p885_p4), %s956_s14, 128, %s954_s17, %s471_s24  }
 0x1d7 PF: > { %p679_p2 = scmp.ge.s32.totalorder %s809_s23, 2  ;;  %s496_s13 = sand.u32 1, %s789_s18  }
 0x1d8   : > { %s497_s15 = scalar_lea.sflag [#allocation3], %s496_s13 }
 0x1d9   : > { %p676_p3 = pnand %p679_p2, %p892_p8 }
 0x1db   : > { %784 = dma.done.wait (!%p676_p3), %s497_s15, 128  }
 0x1dc   : > { %786 = vsyncadd (!%p676_p3), %s497_s15, 4294967168  ;;  %s18_s23 = sadd.s32 1, %s809_s23   ;;  %s1010_s18 = smov %s793_s19 }
 0x1dd   : > { %p15_p5 = scmp.ge.s32.totalorder %s18_s23, 4   ;;  %s1011_s19 = smov %s797_s20 }
 0x1de   : > { %s1012_s20 = smov %s898_s6  ;;  %s1013_s21 = smov %s805_s22 }
 0x1df   : > { %s1014_s22 = smov %s1016_s26  ;;  %17 = sbr.rel (!%p15_p5) target bundleno = 4 (0x4), region = 88 }
 0x1e6   :  { %502 = vsyncpa [#allocation3], 1 }
 0x1e7   :  { %504 = vsyncpa [#allocation3 + $0x1], 1 }

</bundles_post_ra>
